<compile_context>
chip_gen: v7x
topology: tpu7x:2x2x1
jax: 0.10.0
libtpu: 0.0.40
codegen_flags: <defaults>
</compile_context>

<pallas_src>
import functools
import math

import jax
import jax.numpy as jnp
from jax.experimental import pallas as pl
from jax.experimental.pallas import tpu as pltpu


# Lane-dense padded feature widths (>= actual channel counts, multiple of 128).
# 128 (not 256) is the right cross-generation choice: real channels are 16/32/16.
F_PAD = 128   # padded in_channels
H_PAD = 128   # padded hidden_channels
O_PAD = 128   # padded out_channels

NUM_LAYERS = 3  # conv_1, conv_2, conv_last_layer (k = 2)


def _round_up(x, m):
    return (x + m - 1) // m * m


def _choose_tm(n_pad):
    """Largest row tile in {512,384,256,128} that divides n_pad and keeps the
    double-buffered A row tiles under ~24 MiB (so A tiles + h scratch + X fit
    v7x's 64 MiB VMEM; on v5e/v6e there is ample headroom)."""
    for tm in (512, 384, 256, 128):
        if n_pad % tm == 0 and 2 * tm * n_pad * 2 <= 24 * 1024 * 1024:
            return tm
    return 128


# ---------------------------------------------------------------------------
# Fused Pallas kernel: 3 GCN layers (row-tiled aggregation) + row-wise L1 norm
# ---------------------------------------------------------------------------

def _encoder_kernel(a_ref, x_ref, w_ref, b_ref, o_ref, hw_ref, h0_ref, h1_ref):
    l = pl.program_id(0)          # layer index (0, 1, 2)
    i = pl.program_id(1)          # row-tile index
    tm = o_ref.shape[0]

    # --- per-layer feature transform h @ W[l], computed once (row tile 0) ---
    @pl.when(i == 0)
    def _():
        @pl.when(l == 0)
        def _():
            hw_ref[...] = jnp.dot(
                x_ref[...], w_ref[...],
                preferred_element_type=jnp.float32).astype(jnp.bfloat16)

        @pl.when(l == 1)
        def _():
            hw_ref[...] = jnp.dot(
                h0_ref[...], w_ref[...],
                preferred_element_type=jnp.float32).astype(jnp.bfloat16)

        @pl.when(l == 2)
        def _():
            hw_ref[...] = jnp.dot(
                h1_ref[...], w_ref[...],
                preferred_element_type=jnp.float32).astype(jnp.bfloat16)

    # --- row-tiled aggregation: A[i*TM:(i+1)*TM, :] @ (h W[l]) + b[l] ---
    y = jnp.dot(a_ref[...], hw_ref[...], preferred_element_type=jnp.float32)
    y = y + b_ref[...]

    r0 = pl.multiple_of(i * tm, tm)

    @pl.when(l == 0)
    def _():
        h0_ref[pl.ds(r0, tm), :] = jnp.maximum(y, 0.0).astype(jnp.bfloat16)

    @pl.when(l == 1)
    def _():
        h1_ref[pl.ds(r0, tm), :] = jnp.maximum(y, 0.0).astype(jnp.bfloat16)

    @pl.when(l == 2)
    def _():
        # F.normalize(h, p=1, dim=1, eps=1e-12); exact divide in f32,
        # only the stored output is bf16.
        denom = jnp.maximum(jnp.sum(jnp.abs(y), axis=1, keepdims=True), 1e-12)
        o_ref[...] = (y / denom).astype(o_ref.dtype)


def fused_encoder(a_pad, x_pad, w_stack, b_stack):
    n_pad = a_pad.shape[0]
    tm = _choose_tm(n_pad)
    grid = (NUM_LAYERS, n_pad // tm)
    return pl.pallas_call(
        _encoder_kernel,
        out_shape=jax.ShapeDtypeStruct((n_pad, O_PAD), jnp.bfloat16),
        grid=grid,
        in_specs=[
            # A_norm: streamed one row tile at a time (re-streamed per layer).
            pl.BlockSpec((tm, n_pad), lambda l, i: (i, 0)),
            # X: constant block index -> fetched once, stays resident in VMEM.
            pl.BlockSpec((n_pad, F_PAD), lambda l, i: (0, 0)),
            # W[l]: one 128x128 slice of the stacked weights per layer.
            pl.BlockSpec((None, H_PAD, H_PAD), lambda l, i: (l, 0, 0)),
            # b[l]
            pl.BlockSpec((None, 1, H_PAD), lambda l, i: (l, 0, 0)),
        ],
        out_specs=pl.BlockSpec((tm, O_PAD), lambda l, i: (i, 0)),
        scratch_shapes=[
            pltpu.VMEM((n_pad, H_PAD), jnp.bfloat16),   # hW  (current layer)
            pltpu.VMEM((n_pad, H_PAD), jnp.bfloat16),   # h after layer 1
            pltpu.VMEM((n_pad, H_PAD), jnp.bfloat16),   # h after layer 2
        ],
        compiler_params=pltpu.CompilerParams(
            # Row-tile axis must be "arbitrary" here: hW/h scratch is per-core
            # and carries the cross-layer dependency (see header TODO for the
            # v7x megacore-parallel per-layer variant).
            dimension_semantics=("arbitrary", "arbitrary"),
            vmem_limit_bytes=48 * 1024 * 1024,
        ),
    )(a_pad, x_pad, w_stack, b_stack)


# ---------------------------------------------------------------------------
# Plain-JAX glue: graph normalization (G2RGCNConv.norm), init, padding, caching
# ---------------------------------------------------------------------------

def build_norm_adj(edge_index, num_nodes):
    """Dense D^-1/2 (A + I) D^-1/2 with A[dst, src] = norm(src -> dst), f32."""
    src = edge_index[0]
    dst = edge_index[1]
    ew = jnp.ones((src.shape[0],), jnp.float32)
    # add_remaining_self_loops with fill_value=1 (input graph has no self loops)
    loop = jnp.arange(num_nodes, dtype=edge_index.dtype)
    src = jnp.concatenate([src, loop])
    dst = jnp.concatenate([dst, loop])
    ew = jnp.concatenate([ew, jnp.ones((num_nodes,), jnp.float32)])
    deg = jnp.zeros((num_nodes,), jnp.float32).at[src].add(ew)
    deg_inv_sqrt = jnp.where(deg > 0, jax.lax.rsqrt(deg), 0.0)
    norm = deg_inv_sqrt[src] * ew * deg_inv_sqrt[dst]
    return jnp.zeros((num_nodes, num_nodes), jnp.float32).at[dst, src].add(norm)


def prepare_graph_operand(a_f32, num_nodes):
    """Pad the dense normalized adjacency to a multiple of 128 and cast to bf16
    ONCE per graph (A is fixed; do not redo this O(N^2) work per forward)."""
    n_pad = _round_up(num_nodes, 128)
    a = jnp.pad(a_f32, ((0, n_pad - num_nodes), (0, n_pad - num_nodes)))
    return a.astype(jnp.bfloat16)


def glorot_init(key, shape):
    stdv = math.sqrt(6.0 / (shape[-2] + shape[-1]))
    return jax.random.uniform(key, shape, jnp.float32, -stdv, stdv)


def init_params(key, in_channels, hidden_channels, out_channels):
    k1, k2, k3 = jax.random.split(key, 3)
    # Only the layers actually used by Encoder.forward with k=2:
    # conv_1 (in->hidden), conv_2 (hidden->hidden), conv_last_layer (hidden->out).
    return {
        "w1": glorot_init(k1, (in_channels, hidden_channels)),
        "b1": jnp.zeros((hidden_channels,), jnp.float32),
        "w2": glorot_init(k2, (hidden_channels, hidden_channels)),
        "b2": jnp.zeros((hidden_channels,), jnp.float32),
        "wl": glorot_init(k3, (hidden_channels, out_channels)),
        "bl": jnp.zeros((out_channels,), jnp.float32),
    }


def _pad2(a, rows, cols):
    return jnp.pad(a, ((0, rows - a.shape[0]), (0, cols - a.shape[1])))


def prepare_params(params):
    """Stack + zero-pad the three layer weights (bf16) and biases (f32) ONCE."""
    w_stack = jnp.stack([
        _pad2(params["w1"], F_PAD, H_PAD),
        _pad2(params["w2"], H_PAD, H_PAD),
        _pad2(params["wl"], H_PAD, O_PAD),
    ]).astype(jnp.bfloat16)                         # (3, 128, 128)
    b_stack = jnp.stack([
        _pad2(params["b1"].reshape(1, -1), 1, H_PAD),
        _pad2(params["b2"].reshape(1, -1), 1, H_PAD),
        _pad2(params["bl"].reshape(1, -1), 1, O_PAD),
    ])                                              # (3, 1, 128) f32
    return w_stack, b_stack


@functools.partial(jax.jit, static_argnames=("num_nodes", "out_channels"))
def model_forward(x, a_pad, w_stack, b_stack, *, num_nodes, out_channels):
    n_pad = a_pad.shape[0]
    xp = jnp.pad(x, ((0, n_pad - x.shape[0]), (0, F_PAD - x.shape[1])))
    out_p = fused_encoder(a_pad, xp.astype(jnp.bfloat16), w_stack, b_stack)
    return out_p[:num_nodes, :out_channels]


def reference_forward(params, x, a_f32):
    """Pure-JAX f32 reference of Encoder.forward (k=2, ReLU)."""
    def layer(h, w, b, act):
        h = a_f32 @ (h @ w) + b[None, :]
        return jnp.maximum(h, 0.0) if act else h
    h = layer(x, params["w1"], params["b1"], True)
    h = layer(h, params["w2"], params["b2"], True)
    h = layer(h, params["wl"], params["bl"], False)
    denom = jnp.maximum(jnp.sum(jnp.abs(h), axis=1, keepdims=True), 1e-12)
    return h / denom


# ---------------------------------------------------------------------------
# Main
# ---------------------------------------------------------------------------

if __name__ == "__main__":
    N = 16            # num nodes
    IN_CH = 16
    HIDDEN = 32
    OUT_CH = 16

    key = jax.random.PRNGKey(0)
    kx, kp = jax.random.split(key)

    # deterministic node features
    x = jax.random.normal(kx, (N, IN_CH), dtype=jnp.float32)

    # deterministic edge_index: bidirectional ring graph (no self loops)
    fwd_src = jnp.arange(N, dtype=jnp.int32)
    fwd_dst = (fwd_src + 1) % N
    edge_index = jnp.stack([
        jnp.concatenate([fwd_src, fwd_dst]),
        jnp.concatenate([fwd_dst, fwd_src]),
    ], axis=0)  # shape (2, 2N)

    params = init_params(kp, IN_CH, HIDDEN, OUT_CH)

    # Per-graph / per-parameter preprocessing done once, outside the forward.
    a_f32 = build_norm_adj(edge_index, N)
    a_pad = prepare_graph_operand(a_f32, N)
    w_stack, b_stack = prepare_params(params)

    out = model_forward(x, a_pad, w_stack, b_stack,
                        num_nodes=N, out_channels=OUT_CH)
    out = jax.block_until_ready(out)

    assert out.shape == (N, OUT_CH)
    out_f32 = out.astype(jnp.float32)
    assert bool(jnp.all(jnp.isfinite(out_f32)))
    # rows are L1-normalized (exact f32 divide; only the output store is bf16)
    assert bool(jnp.allclose(jnp.sum(jnp.abs(out_f32), axis=1), 1.0, atol=1e-2))
    # matches the f32 reference within bf16 tolerance
    ref = reference_forward(params, x, a_f32)
    assert bool(jnp.allclose(out_f32, ref, atol=5e-2, rtol=5e-2))

    print("KERNEL_OK")
</pallas_src>

<mosaic_0001>
module attributes {stable_mosaic.version = 11 : i64} {
  func.func @_encoder_kernel(%arg0: i32, %arg1: i32, %arg2: memref<128x128xbf16, #tpu.memory_space<vmem>>, %arg3: memref<128x128xbf16, #tpu.memory_space<vmem>>, %arg4: memref<1x128x128xbf16, #tpu.memory_space<vmem>>, %arg5: memref<1x1x128xf32, #tpu.memory_space<vmem>>, %arg6: memref<128x128xbf16, #tpu.memory_space<vmem>>, %arg7: memref<128x128xbf16, #tpu.memory_space<vmem>>, %arg8: memref<128x128xbf16, #tpu.memory_space<vmem>>, %arg9: memref<128x128xbf16, #tpu.memory_space<vmem>>) attributes {dimension_semantics = [#tpu.dimension_semantics<arbitrary>, #tpu.dimension_semantics<arbitrary>], iteration_bounds = array<i64: 3, 1>, scalar_prefetch = 0 : i64, scratch_operands = 3 : i64, tpu.core_type = #tpu.core_type<tc>, window_params = [{transform_indices = @transform_0, window_bounds = array<i64: 128, 128>}, {pipeline_mode = #tpu.pipeline_mode<synchronous>, transform_indices = @transform_1, window_bounds = array<i64: 128, 128>}, {transform_indices = @transform_2, window_bounds = array<i64: 1, 128, 128>}, {transform_indices = @transform_3, window_bounds = array<i64: 1, 1, 128>}, {transform_indices = @transform_4, window_bounds = array<i64: 128, 128>}]} {
    %c0_i32 = arith.constant 0 : i32
    %0 = arith.cmpi eq, %arg1, %c0_i32 : i32
    %1 = arith.extui %0 : i1 to i32
    %c0_i32_0 = arith.constant 0 : i32
    %2 = arith.cmpi ne, %1, %c0_i32_0 : i32
    scf.if %2 {
      %c0_i32_11 = arith.constant 0 : i32
      %21 = arith.cmpi eq, %arg0, %c0_i32_11 : i32
      %22 = arith.extui %21 : i1 to i32
      %c0_i32_12 = arith.constant 0 : i32
      %23 = arith.cmpi ne, %22, %c0_i32_12 : i32
      scf.if %23 {
        %c0_17 = arith.constant 0 : index
        %c0_18 = arith.constant 0 : index
        %30 = vector.load %arg3[%c0_17, %c0_18] : memref<128x128xbf16, #tpu.memory_space<vmem>>, vector<128x128xbf16>
        %c0_19 = arith.constant 0 : index
        %c0_20 = arith.constant 0 : index
        %c0_21 = arith.constant 0 : index
        %31 = vector.load %arg4[%c0_19, %c0_20, %c0_21] : memref<1x128x128xbf16, #tpu.memory_space<vmem>>, vector<1x128x128xbf16>
        %32 = vector.shape_cast %31 : vector<1x128x128xbf16> to vector<128x128xbf16>
        %cst_22 = arith.constant dense<0.000000e+00> : vector<128x128xf32>
        %33 = tpu.matmul %30, %32, %cst_22 {dimension_numbers = #tpu.dot_dimension_numbers<[1], [0], [0], [1], [0, 0, 1, 1], [], []>} : vector<128x128xbf16>, vector<128x128xbf16>, vector<128x128xf32> -> vector<128x128xf32>
        %34 = arith.truncf %33 : vector<128x128xf32> to vector<128x128xbf16>
        %c0_23 = arith.constant 0 : index
        %c0_24 = arith.constant 0 : index
        %35 = vector.load %arg7[%c0_23, %c0_24] : memref<128x128xbf16, #tpu.memory_space<vmem>>, vector<128x128xbf16>
        tpu.vector_store %arg7[%c0_23, %c0_24], %34 {strides = array<i32>} : memref<128x128xbf16, #tpu.memory_space<vmem>>, vector<128x128xbf16>,
      } else {
      }
      %c1_i32_13 = arith.constant 1 : i32
      %24 = arith.cmpi eq, %arg0, %c1_i32_13 : i32
      %25 = arith.extui %24 : i1 to i32
      %c0_i32_14 = arith.constant 0 : i32
      %26 = arith.cmpi ne, %25, %c0_i32_14 : i32
      scf.if %26 {
        %c0_17 = arith.constant 0 : index
        %c0_18 = arith.constant 0 : index
        %30 = vector.load %arg8[%c0_17, %c0_18] : memref<128x128xbf16, #tpu.memory_space<vmem>>, vector<128x128xbf16>
        %c0_19 = arith.constant 0 : index
        %c0_20 = arith.constant 0 : index
        %c0_21 = arith.constant 0 : index
        %31 = vector.load %arg4[%c0_19, %c0_20, %c0_21] : memref<1x128x128xbf16, #tpu.memory_space<vmem>>, vector<1x128x128xbf16>
        %32 = vector.shape_cast %31 : vector<1x128x128xbf16> to vector<128x128xbf16>
        %cst_22 = arith.constant dense<0.000000e+00> : vector<128x128xf32>
        %33 = tpu.matmul %30, %32, %cst_22 {dimension_numbers = #tpu.dot_dimension_numbers<[1], [0], [0], [1], [0, 0, 1, 1], [], []>} : vector<128x128xbf16>, vector<128x128xbf16>, vector<128x128xf32> -> vector<128x128xf32>
        %34 = arith.truncf %33 : vector<128x128xf32> to vector<128x128xbf16>
        %c0_23 = arith.constant 0 : index
        %c0_24 = arith.constant 0 : index
        %35 = vector.load %arg7[%c0_23, %c0_24] : memref<128x128xbf16, #tpu.memory_space<vmem>>, vector<128x128xbf16>
        tpu.vector_store %arg7[%c0_23, %c0_24], %34 {strides = array<i32>} : memref<128x128xbf16, #tpu.memory_space<vmem>>, vector<128x128xbf16>,
      } else {
      }
      %c2_i32_15 = arith.constant 2 : i32
      %27 = arith.cmpi eq, %arg0, %c2_i32_15 : i32
      %28 = arith.extui %27 : i1 to i32
      %c0_i32_16 = arith.constant 0 : i32
      %29 = arith.cmpi ne, %28, %c0_i32_16 : i32
      scf.if %29 {
        %c0_17 = arith.constant 0 : index
        %c0_18 = arith.constant 0 : index
        %30 = vector.load %arg9[%c0_17, %c0_18] : memref<128x128xbf16, #tpu.memory_space<vmem>>, vector<128x128xbf16>
        %c0_19 = arith.constant 0 : index
        %c0_20 = arith.constant 0 : index
        %c0_21 = arith.constant 0 : index
        %31 = vector.load %arg4[%c0_19, %c0_20, %c0_21] : memref<1x128x128xbf16, #tpu.memory_space<vmem>>, vector<1x128x128xbf16>
        %32 = vector.shape_cast %31 : vector<1x128x128xbf16> to vector<128x128xbf16>
        %cst_22 = arith.constant dense<0.000000e+00> : vector<128x128xf32>
        %33 = tpu.matmul %30, %32, %cst_22 {dimension_numbers = #tpu.dot_dimension_numbers<[1], [0], [0], [1], [0, 0, 1, 1], [], []>} : vector<128x128xbf16>, vector<128x128xbf16>, vector<128x128xf32> -> vector<128x128xf32>
        %34 = arith.truncf %33 : vector<128x128xf32> to vector<128x128xbf16>
        %c0_23 = arith.constant 0 : index
        %c0_24 = arith.constant 0 : index
        %35 = vector.load %arg7[%c0_23, %c0_24] : memref<128x128xbf16, #tpu.memory_space<vmem>>, vector<128x128xbf16>
        tpu.vector_store %arg7[%c0_23, %c0_24], %34 {strides = array<i32>} : memref<128x128xbf16, #tpu.memory_space<vmem>>, vector<128x128xbf16>,
      } else {
      }
    } else {
    }
    %c0 = arith.constant 0 : index
    %c0_1 = arith.constant 0 : index
    %3 = vector.load %arg2[%c0, %c0_1] : memref<128x128xbf16, #tpu.memory_space<vmem>>, vector<128x128xbf16>
    %c0_2 = arith.constant 0 : index
    %c0_3 = arith.constant 0 : index
    %4 = vector.load %arg7[%c0_2, %c0_3] : memref<128x128xbf16, #tpu.memory_space<vmem>>, vector<128x128xbf16>
    %cst = arith.constant dense<0.000000e+00> : vector<128x128xf32>
    %5 = tpu.matmul %3, %4, %cst {dimension_numbers = #tpu.dot_dimension_numbers<[1], [0], [0], [1], [0, 0, 1, 1], [], []>} : vector<128x128xbf16>, vector<128x128xbf16>, vector<128x128xf32> -> vector<128x128xf32>
    %c0_4 = arith.constant 0 : index
    %c0_5 = arith.constant 0 : index
    %c0_6 = arith.constant 0 : index
    %6 = vector.load %arg5[%c0_4, %c0_5, %c0_6] : memref<1x1x128xf32, #tpu.memory_space<vmem>>, vector<1x1x128xf32>
    %7 = vector.shape_cast %6 : vector<1x1x128xf32> to vector<1x128xf32>
    %8 = vector.broadcast %7 : vector<1x128xf32> to vector<128x128xf32>
    %9 = arith.addf %5, %8 : vector<128x128xf32>
    %c128_i32 = arith.constant 128 : i32
    %10 = arith.muli %arg1, %c128_i32 : i32
    %11 = tpu.assume_multiple %10, 128 : i32
    %c0_i32_7 = arith.constant 0 : i32
    %12 = arith.cmpi eq, %arg0, %c0_i32_7 : i32
    %13 = arith.extui %12 : i1 to i32
    %c0_i32_8 = arith.constant 0 : i32
    %14 = arith.cmpi ne, %13, %c0_i32_8 : i32
    scf.if %14 {
      %cst_11 = arith.constant 0.000000e+00 : f32
      %21 = vector.broadcast %cst_11 : f32 to vector<128x128xf32>
      %22 = arith.maximumf %9, %21 : vector<128x128xf32>
      %23 = arith.truncf %22 : vector<128x128xf32> to vector<128x128xbf16>
      %24 = arith.index_cast %11 : i32 to index
      %c0_12 = arith.constant 0 : index
      %25 = vector.load %arg8[%24, %c0_12] : memref<128x128xbf16, #tpu.memory_space<vmem>>, vector<128x128xbf16>
      tpu.vector_store %arg8[%24, %c0_12], %23 {strides = array<i32>} : memref<128x128xbf16, #tpu.memory_space<vmem>>, vector<128x128xbf16>,
    } else {
    }
    %c1_i32 = arith.constant 1 : i32
    %15 = arith.cmpi eq, %arg0, %c1_i32 : i32
    %16 = arith.extui %15 : i1 to i32
    %c0_i32_9 = arith.constant 0 : i32
    %17 = arith.cmpi ne, %16, %c0_i32_9 : i32
    scf.if %17 {
      %cst_11 = arith.constant 0.000000e+00 : f32
      %21 = vector.broadcast %cst_11 : f32 to vector<128x128xf32>
      %22 = arith.maximumf %9, %21 : vector<128x128xf32>
      %23 = arith.truncf %22 : vector<128x128xf32> to vector<128x128xbf16>
      %24 = arith.index_cast %11 : i32 to index
      %c0_12 = arith.constant 0 : index
      %25 = vector.load %arg9[%24, %c0_12] : memref<128x128xbf16, #tpu.memory_space<vmem>>, vector<128x128xbf16>
      tpu.vector_store %arg9[%24, %c0_12], %23 {strides = array<i32>} : memref<128x128xbf16, #tpu.memory_space<vmem>>, vector<128x128xbf16>,
    } else {
    }
    %c2_i32 = arith.constant 2 : i32
    %18 = arith.cmpi eq, %arg0, %c2_i32 : i32
    %19 = arith.extui %18 : i1 to i32
    %c0_i32_10 = arith.constant 0 : i32
    %20 = arith.cmpi ne, %19, %c0_i32_10 : i32
    scf.if %20 {
      %21 = math.absf %9 : vector<128x128xf32>
      %cst_11 = arith.constant dense<0.000000e+00> : vector<128xf32>
      %22 = vector.multi_reduction <add>, %21, %cst_11 [1] : vector<128x128xf32> to vector<128xf32>
      %23 = vector.shape_cast %22 : vector<128xf32> to vector<128x1xf32>
      %cst_12 = arith.constant 9.99999996E-13 : f32
      %24 = vector.broadcast %cst_12 : f32 to vector<128x1xf32>
      %25 = arith.maximumf %23, %24 : vector<128x1xf32>
      %26 = vector.broadcast %25 : vector<128x1xf32> to vector<128x128xf32>
      %27 = arith.divf %9, %26 : vector<128x128xf32>
      %28 = arith.truncf %27 : vector<128x128xf32> to vector<128x128xbf16>
      %c0_13 = arith.constant 0 : index
      %c0_14 = arith.constant 0 : index
      %29 = vector.load %arg6[%c0_13, %c0_14] : memref<128x128xbf16, #tpu.memory_space<vmem>>, vector<128x128xbf16>
      tpu.vector_store %arg6[%c0_13, %c0_14], %28 {strides = array<i32>} : memref<128x128xbf16, #tpu.memory_space<vmem>>, vector<128x128xbf16>,
    } else {
    }
    return
  }
  func.func @transform_0(%arg0: i32, %arg1: i32) -> (i32, i32) {
    %c0_i32 = arith.constant 0 : i32
    %c0_i32_0 = arith.constant 0 : i32
    return %arg1, %c0_i32 : i32, i32
  }
  func.func @transform_1(%arg0: i32, %arg1: i32) -> (i32, i32) {
    %c0_i32 = arith.constant 0 : i32
    %c0_i32_0 = arith.constant 0 : i32
    %c0_i32_1 = arith.constant 0 : i32
    return %c0_i32, %c0_i32_0 : i32, i32
  }
  func.func @transform_2(%arg0: i32, %arg1: i32) -> (i32, i32, i32) {
    %c0_i32 = arith.constant 0 : i32
    %c0_i32_0 = arith.constant 0 : i32
    %c0_i32_1 = arith.constant 0 : i32
    return %arg0, %c0_i32, %c0_i32_0 : i32, i32, i32
  }
  func.func @transform_3(%arg0: i32, %arg1: i32) -> (i32, i32, i32) {
    %c0_i32 = arith.constant 0 : i32
    %c0_i32_0 = arith.constant 0 : i32
    %c0_i32_1 = arith.constant 0 : i32
    return %arg0, %c0_i32, %c0_i32_0 : i32, i32, i32
  }
  func.func @transform_4(%arg0: i32, %arg1: i32) -> (i32, i32) {
    %c0_i32 = arith.constant 0 : i32
    %c0_i32_0 = arith.constant 0 : i32
    return %arg1, %c0_i32 : i32, i32
  }
}

</mosaic_0001>

<bundles_post_ra>
// kernel: model_forward.1
= control target key start
LH: loop header
LB: loop body
LE: loop exit
PB: predicated region body
PF: predicated region fallthrough
CT: control target
= control target key end

     0   :  { %9 = vsyncpa [#allocation6], 0  ;;  %s2409_s0 = inlined_call_operand.vmem [shape: bf16[128,128], index: 0, kind: input, shape index: {}]   ;;  %s2410_s1 = inlined_call_operand.vmem [shape: bf16[128,128], index: 1, kind: input, shape index: {}]   ;;  %s2411_s2 = inlined_call_operand.hbm [shape: bf16[3,128,128], index: 2, kind: input, shape index: {}]   ;;  %s2412_s3 = inlined_call_operand.vmem [shape: f32[3,1,128], index: 3, kind: input, shape index: {}]   ;;  %s2413_s4 = inlined_call_operand.vmem [shape: bf16[128,128], index: 4, kind: output, shape index: {}]  }
   0x1   :  { %11 = vsyncpa [#allocation6 + $0x1], 0  ;;  %s2068_s15 = smov 0   ;;  %s2070_s16 = smov 0  }
   0x2   :  { %s2072_s17 = smov 0   ;;  %s2074_s18 = smov 0  }
   0x3   :  { %s2076_s19 = smov 0   ;;  %s2078_s20 = smov 0  }
   0x4 LB: > { %s1433_s21 = sadd.s32 4294967295, %s2038_s20   ;;  %s29_s22 = sadd.s32 1, %s2034_s19  ;;  %s2038_s20 = sphi %s2078_s20, %s17_s20   ;;  %s2034_s19 = sphi %s2076_s19, %s2421_s19   ;;  %s2030_s18 = sphi %s2074_s18, %s2420_s18   ;;  %s2026_s17 = sphi %s2072_s17, %s2419_s17   ;;  %s2022_s16 = sphi %s2070_s16, %s2418_s16   ;;  %s2018_s15 = sphi %s2068_s15, %s2417_s15  }
   0x5   : > { %p31_p0 = scmp.ge.s32.totalorder %s29_s22, 3  ;;  %s83_s23 = sadd.s32 1, %s2026_s17 }
   0x6   : > { %p90_p1 = scmp.ne.s32.totalorder %s2026_s17, %s2022_s16  ;;  %p91_p2 = scmp.eq.s32.totalorder %s2038_s20, 0 }
   0x7   : > { %s2423_s22 = smov (%p31_p0, %s29_s22), 0  ;;  %p96_p4 = scmp.ne.s32.totalorder %s2022_s16, %s2018_s15 }
   0x8   : > { %p2104_p3 = por %p91_p2, %p90_p1  ;;  %s80_s25 = ssub.s32 %s2034_s19, %s2423_s22 }
   0x9   : > { %p97_p5 = scmp.eq.s32.totalorder %s1433_s21, 0  ;;  %p81_p6 = scmp.eq.s32.totalorder %s80_s25, 0 }
   0xa   : > { %p1835_p8 = scmp.lt.s32.totalorder %s2038_s20, 3  ;;  %s184_s28 = sand.u32 1, %s2026_s17  }
   0xb   : > { %p2111_p7 = por %p97_p5, %p96_p4  ;;  %s1509_s29 = sshll.u32 %s2034_s19, 10 }
   0xc   : > { %s2117_s27 = scalar_select %p81_p6, %s2026_s17, %s83_s23  }
   0xd   : > { %s1437_s30 = sshll.u32 %s184_s28, 6  ;;  %s2124_s7 = scalar_lea.hbm %s2411_s2, %s1509_s29 }
   0xe   : > { %s188_s8 = scalar_lea.vmem [#allocation5], %s1437_s30  ;;  %p2128_p9 = pnand %p1835_p8, %p2104_p3 }
   0xf   : > { %s195_s9 = sshll.u32 %s188_s8, 4  ;;  %s2134_s11 = scalar_lea.sflag [#allocation6], %s184_s28  ;;  %s2132_s9 = int_to_ptr.vmem [resolvable:$true] %s195_s9 }
  0x10   : > { %s1958_s12 = scalar_lea.hbm %s2124_s7, 1024  ;;  %p1960_p11 = pneg %p2128_p9 }
  0x11   : > { %p1959_p10 = scmp.ne.s32.totalorder %s2124_s7, %s1958_s12  ;;  %s1963_s15 = scalar_lea.hbm %s2411_s2, 3072 }
  0x12   : > { %p1964_p0 = scmp.lt.u32.totalorder %s2124_s7, %s2411_s2  ;;  %p1965_p1 = scmp.lt.u32.totalorder %s1963_s15, %s1958_s12 }
  0x13   : > { %p1961_p12 = pnand %p1960_p11, %p1959_p10  ;;  %p1967_p3 = scmp.lt.u32.totalorder %s1958_s12, %s2124_s7 }
  0x14   : > { %p1966_p2 = por %p1965_p1, %p1964_p0 }
  0x15   : > { %p1962_p13 = pneg %p1961_p12 }
  0x16   : > { %p1968_p4 = por %p1967_p3, %p1966_p2 }
  0x18   : > { %p1969_p5 = pnand %p1968_p4, %p1962_p13 }
  0x1a   : > { %1972 = shalt.err (!%p1969_p5)
}
  0x1b   : > { %s1973_s24 = scalar_lea.vmem %s2132_s9, 1024  ;;  %s2040_s25 = smov [#allocation5]  }
  0x1c   : > { %p1974_p6 = scmp.ne.s32.totalorder %s2132_s9, %s1973_s24  ;;  %s1978_s28 = sshll.u32 %s2040_s25, 4  ;;  %s1979_s28 = int_to_ptr.vmem [resolvable:$false] %s1978_s28 }
  0x1d   : > { %s1980_s29 = scalar_lea.vmem %s1979_s28, 2048  ;;  %p1981_p12 = scmp.lt.s32.totalorder %s2132_s9, %s1979_s28 }
  0x1e   : > { %p1976_p8 = pnand %p1974_p6, %p1960_p11  ;;  %p1982_p0 = scmp.lt.s32.totalorder %s1980_s29, %s1973_s24 }
  0x20   : > { %p1977_p10 = pneg %p1976_p8  ;;  %p1983_p1 = por %p1982_p0, %p1981_p12 }
  0x22   : > { %p1984_p2 = pnand %p1983_p1, %p1977_p10 }
  0x24   : > { %1987 = shalt.err (!%p1984_p2)
}
  0x25   : > { %s2041_s30 = smov 64   ;;  %s2042_s5 = smov 4  }
  0x26   : > { %1834 = dma.hbm_to_vmem [thread:$0]  (!%p2128_p9), %s2124_s7, 1024, %s2132_s9, %s2134_s11, %s2041_s30, %s2041_s30, %s2042_s5  }
  0x27   : > { %p1440_p11 = scmp.ge.s32.totalorder %s2038_s20, 1  ;;  %p209_p13 = scmp.lt.s32.totalorder %s2038_s20, 4 }
  0x29   : > { %p210_p3 = pnand %p1440_p11, %p209_p13 }
  0x2a   : > { %s215_s6 = sand.u32 (!%p210_p3), 1, %s2022_s16  }
  0x2b   : > { %213 = sbr.rel (%p210_p3) target bundleno = 1296 (0x510), region = 36  ;;  %s1441_s8 = sshll.u32 (!%p210_p3), %s215_s6, 6 }
  0x2c   : > { %s216_s12 = scalar_lea.sflag (!%p210_p3), [#allocation6], %s215_s6  ;;  %s2165_s13 = scalar_lea.vmem (!%p210_p3), [#allocation5], %s1441_s8 }
  0x32   : > { %2013 = dma.done.wait (%p2111_p7), %s216_s12, 1024  }
  0x33   : > { %2015 = vsyncadd (%p2111_p7), %s216_s12, 4294966272  ;;  %p258_p4 = scmp.lt.s32.totalorder %s2030_s18, 2  ;;  %p1442_p9 = scmp.ne.s32.totalorder %s2030_s18, 0 }
  0x34   : > { %v1886_v0 = vld [vmem:[%s2165_s13] sm:$0xff] (!%p1442_p9)   ;;  %v1887_v1 = vld [vmem:[%s2165_s13 + $0x8] sm:$0xff] (!%p1442_p9)   ;;  %v1888_v2 = vld [vmem:[%s2165_s13 + $0x10] sm:$0xff] (!%p1442_p9)  }
  0x35   : > { %s2173_s7 = scalar_select %p258_p4, %s2030_s18, 2 }
  0x36   : > { %275 = sbr.rel (%p1442_p9) target bundleno = 312 (0x138), region = 48  ;;  %1637 = vmatprep.subr.bf16.mxu0 (!%p1442_p9), %v1886_v0  ;;  %1765 = vmatprep.subr.bf16.mxu1 (!%p1442_p9), %v1886_v0  ;;  %v1889_v3 = vld [vmem:[%s2165_s13 + $0x18] sm:$0xff] (!%p1442_p9)   ;;  %v1894_v4 = vld [vmem:[%s2410_s1] sm:$0xff] (!%p1442_p9)   ;;  %v1891_v7 = vld [vmem:[%s2165_s13 + $0x28] sm:$0xff] (!%p1442_p9)  }
  0x37   : > { %s260_s11 = scalar_lea.vmem %s2412_s3, %s2173_s7  ;;  %1638 = vmatpush3.bf16.msra.mxu0 (!%p1442_p9), %v1886_v0  ;;  %1773 = vmatpush3.bf16.msra.mxu1 (!%p1442_p9), %v1886_v0  ;;  %v1895_v5 = vld [vmem:[%s2410_s1 + $0x20] sm:$0xff] (!%p1442_p9)   ;;  %v1892_v8 = vld [vmem:[%s2165_s13 + $0x30] sm:$0xff] (!%p1442_p9)   ;;  %v1893_v9 = vld [vmem:[%s2165_s13 + $0x38] sm:$0xff] (!%p1442_p9)  }
  0x38   : > { %1639 = vmatprep.subr.bf16.mxu0 (!%p1442_p9), %v1887_v1  ;;  %1766 = vmatprep.subr.bf16.mxu1 (!%p1442_p9), %v1887_v1  ;;  %v1890_v6 = vld [vmem:[%s2165_s13 + $0x20] sm:$0xff] (!%p1442_p9)   ;;  %v1896_v10 = vld [vmem:[%s2410_s1 + $0x8] sm:$0xff] (!%p1442_p9)   ;;  %v1898_v12 = vld [vmem:[%s2410_s1 + $0x10] sm:$0xff] (!%p1442_p9)  }
  0x39   : > { %1653 = vmatprep.mubr.bf16.mxu0 (!%p1442_p9), %v1894_v4  ;;  %1661 = vmatprep.mubr.bf16.mxu1 (!%p1442_p9), %v1895_v5  ;;  %v1897_v11 = vld [vmem:[%s2410_s1 + $0x28] sm:$0xff] (!%p1442_p9)   ;;  %v1899_v13 = vld [vmem:[%s2410_s1 + $0x30] sm:$0xff] (!%p1442_p9)   ;;  %v1900_v14 = vld [vmem:[%s2410_s1 + $0x18] sm:$0xff] (!%p1442_p9)  }
  0x3a   : > { %v1901_v15 = vld [vmem:[%s2410_s1 + $0x38] sm:$0xff] (!%p1442_p9)  }
  0x3b   : > { %1640 = vmatpush3.bf16.msra.mxu0 (!%p1442_p9), %v1887_v1  ;;  %1774 = vmatpush3.bf16.msra.mxu1 (!%p1442_p9), %v1887_v1 }
  0x3c   : > { %1641 = vmatprep.subr.bf16.mxu0 (!%p1442_p9), %v1888_v2  ;;  %1767 = vmatprep.subr.bf16.mxu1 (!%p1442_p9), %v1888_v2 }
  0x3f   : > { %1642 = vmatpush3.bf16.msra.mxu0 %v1888_v2  ;;  %1775 = vmatpush3.bf16.msra.mxu1 %v1888_v2 }
  0x40   : > { %1643 = vmatprep.subr.bf16.mxu0 %v1889_v3  ;;  %1768 = vmatprep.subr.bf16.mxu1 %v1889_v3 }
  0x43   : > { %1644 = vmatpush3.bf16.msra.mxu0 %v1889_v3  ;;  %1776 = vmatpush3.bf16.msra.mxu1 %v1889_v3 }
  0x44   : > { %1645 = vmatprep.subr.bf16.mxu0 %v1890_v6  ;;  %1769 = vmatprep.subr.bf16.mxu1 %v1890_v6 }
  0x47   : > { %1646 = vmatpush3.bf16.msra.mxu0 %v1890_v6  ;;  %1777 = vmatpush3.bf16.msra.mxu1 %v1890_v6 }
  0x48   : > { %1647 = vmatprep.subr.bf16.mxu0 %v1891_v7  ;;  %1770 = vmatprep.subr.bf16.mxu1 %v1891_v7 }
  0x4b   : > { %1648 = vmatpush3.bf16.msra.mxu0 %v1891_v7  ;;  %1778 = vmatpush3.bf16.msra.mxu1 %v1891_v7 }
  0x4c   : > { %1649 = vmatprep.subr.bf16.mxu0 %v1892_v8  ;;  %1771 = vmatprep.subr.bf16.mxu1 %v1892_v8 }
  0x4f   : > { %1650 = vmatpush3.bf16.msra.mxu0 %v1892_v8  ;;  %1779 = vmatpush3.bf16.msra.mxu1 %v1892_v8 }
  0x50   : > { %1651 = vmatprep.subr.bf16.mxu0 %v1893_v9  ;;  %1772 = vmatprep.subr.bf16.mxu1 %v1893_v9 }
  0x53   : > { %1652 = vmatpush3.bf16.msra.mxu0 %v1893_v9  ;;  %1780 = vmatpush3.bf16.msra.mxu1 %v1893_v9 }
  0x56   : > { %1654 = vmatmul.mubr.bf16.vlgmr.msra.gmra.mrb[0].mxu0 %v1896_v10  ;;  %1662 = vmatmul.mubr.bf16.vlgmr.msra.gmra.mrb[0].mxu1 %v1897_v11 }
  0x57   : > { %1657 = vmatprep.mubr.bf16.mxu0 %v1898_v12  ;;  %1665 = vmatprep.mubr.bf16.mxu1 %v1899_v13 }
  0x5e   : > { %1658 = vmatmul.mubr.bf16.gmra.mrb[4].mxu0 %v1900_v14  ;;  %1666 = vmatmul.mubr.bf16.gmra.mrb[4].mxu1 %v1901_v15 }
 0x129   : > { %v1655_v16 = vpop.f32.mrb[0].mxu0  ;;  %v1663_v17 = vpop.f32.mrb[0].mxu1 }
 0x12a   : > { %v438_v18 = vpop.f32.mrb[1].mxu0  ;;  %v470_v19 = vpop.f32.mrb[1].mxu1 }
 0x12b   : > { %v1656_v20 = vpop.f32.mrb[2].mxu0  ;;  %v1664_v21 = vpop.f32.mrb[2].mxu1 }
 0x12c   : > { %v502_v22 = vpack.c.bf16 %v1656_v20, %v1655_v16  ;;  %v506_v23 = vpack.c.bf16 %v1664_v21, %v1663_v17  ;;  %v441_v24 = vpop.f32.mrb[3].mxu0  ;;  %v473_v25 = vpop.f32.mrb[3].mxu1 }
 0x12d   : > { %v501_v26 = vpack.c.bf16 %v441_v24, %v438_v18  ;;  %v505_v27 = vpack.c.bf16 %v473_v25, %v470_v19 }
 0x12e   : > { %510 = vst [vmem:[#allocation2 + $0x8] sm:$0xff] %v502_v22  ;;  %514 = vst [vmem:[#allocation2 + $0x28] sm:$0xff] %v506_v23 }
 0x12f   : > { %509 = vst [vmem:[#allocation2] sm:$0xff] %v501_v26  ;;  %513 = vst [vmem:[#allocation2 + $0x20] sm:$0xff] %v505_v27 }
 0x131   : > { %v1659_v28 = vpop.f32.mrb[4].mxu0  ;;  %v1667_v29 = vpop.f32.mrb[4].mxu1 }
 0x132   : > { %v454_v30 = vpop.f32.mrb[5].mxu0  ;;  %v486_v31 = vpop.f32.mrb[5].mxu1 }
 0x133   : > { %v1660_v32 = vpop.f32.mrb[6].mxu0  ;;  %v1668_v33 = vpop.f32.mrb[6].mxu1 }
 0x134   : > { %v504_v34 = vpack.c.bf16 %v1660_v32, %v1659_v28  ;;  %v508_v35 = vpack.c.bf16 %v1668_v33, %v1667_v29  ;;  %v457_v36 = vpop.f32.mrb[7].mxu0  ;;  %v489_v37 = vpop.f32.mrb[7].mxu1 }
 0x135   : > { %v503_v38 = vpack.c.bf16 %v457_v36, %v454_v30  ;;  %v507_v39 = vpack.c.bf16 %v489_v37, %v486_v31 }
 0x136   : > { %512 = vst [vmem:[#allocation2 + $0x18] sm:$0xff] %v504_v34  ;;  %516 = vst [vmem:[#allocation2 + $0x38] sm:$0xff] %v508_v35 }
 0x137   : > { %511 = vst [vmem:[#allocation2 + $0x10] sm:$0xff] %v503_v38  ;;  %515 = vst [vmem:[#allocation2 + $0x30] sm:$0xff] %v507_v39 }
 0x138 PF: > { %p1459_p7 = scmp.ne.s32.totalorder %s2030_s18, 1 }
 0x139   : > { %v1902_v40 = vld [vmem:[%s2165_s13] sm:$0xff] (!%p1459_p7)   ;;  %v1903_v41 = vld [vmem:[%s2165_s13 + $0x8] sm:$0xff] (!%p1459_p7)   ;;  %v1904_v42 = vld [vmem:[%s2165_s13 + $0x10] sm:$0xff] (!%p1459_p7)  }
 0x13a   : > { %520 = sbr.rel (%p1459_p7) target bundleno = 572 (0x23c), region = 52  ;;  %1669 = vmatprep.subr.bf16.mxu0 (!%p1459_p7), %v1902_v40  ;;  %1781 = vmatprep.subr.bf16.mxu1 (!%p1459_p7), %v1902_v40  ;;  %v1905_v43 = vld [vmem:[%s2165_s13 + $0x18] sm:$0xff] (!%p1459_p7)   ;;  %v521_v44 = vld [vmem:[#allocation3] sm:$0xff] (!%p1459_p7)  ;;  %v1907_v47 = vld [vmem:[%s2165_s13 + $0x28] sm:$0xff] (!%p1459_p7)  }
 0x13b   : > { %1670 = vmatpush3.bf16.msra.mxu0 (!%p1459_p7), %v1902_v40  ;;  %1789 = vmatpush3.bf16.msra.mxu1 (!%p1459_p7), %v1902_v40  ;;  %v525_v45 = vld [vmem:[#allocation3 + $0x20] sm:$0xff] (!%p1459_p7)  ;;  %v1908_v48 = vld [vmem:[%s2165_s13 + $0x30] sm:$0xff] (!%p1459_p7)   ;;  %v1909_v49 = vld [vmem:[%s2165_s13 + $0x38] sm:$0xff] (!%p1459_p7)  }
 0x13c   : > { %1671 = vmatprep.subr.bf16.mxu0 (!%p1459_p7), %v1903_v41  ;;  %1782 = vmatprep.subr.bf16.mxu1 (!%p1459_p7), %v1903_v41  ;;  %v1906_v46 = vld [vmem:[%s2165_s13 + $0x20] sm:$0xff] (!%p1459_p7)   ;;  %v522_v50 = vld [vmem:[#allocation3 + $0x8] sm:$0xff] (!%p1459_p7)  ;;  %v523_v52 = vld [vmem:[#allocation3 + $0x10] sm:$0xff] (!%p1459_p7) }
 0x13d   : > { %1685 = vmatprep.mubr.bf16.mxu0 (!%p1459_p7), %v521_v44  ;;  %1693 = vmatprep.mubr.bf16.mxu1 (!%p1459_p7), %v525_v45  ;;  %v526_v51 = vld [vmem:[#allocation3 + $0x28] sm:$0xff] (!%p1459_p7)  ;;  %v527_v53 = vld [vmem:[#allocation3 + $0x30] sm:$0xff] (!%p1459_p7)  ;;  %v524_v54 = vld [vmem:[#allocation3 + $0x18] sm:$0xff] (!%p1459_p7) }
 0x13e   : > { %v528_v55 = vld [vmem:[#allocation3 + $0x38] sm:$0xff] (!%p1459_p7) }
 0x13f   : > { %1672 = vmatpush3.bf16.msra.mxu0 (!%p1459_p7), %v1903_v41  ;;  %1790 = vmatpush3.bf16.msra.mxu1 (!%p1459_p7), %v1903_v41 }
 0x140   : > { %1673 = vmatprep.subr.bf16.mxu0 (!%p1459_p7), %v1904_v42  ;;  %1783 = vmatprep.subr.bf16.mxu1 (!%p1459_p7), %v1904_v42 }
 0x143   : > { %1674 = vmatpush3.bf16.msra.mxu0 %v1904_v42  ;;  %1791 = vmatpush3.bf16.msra.mxu1 %v1904_v42 }
 0x144   : > { %1675 = vmatprep.subr.bf16.mxu0 %v1905_v43  ;;  %1784 = vmatprep.subr.bf16.mxu1 %v1905_v43 }
 0x147   : > { %1676 = vmatpush3.bf16.msra.mxu0 %v1905_v43  ;;  %1792 = vmatpush3.bf16.msra.mxu1 %v1905_v43 }
 0x148   : > { %1677 = vmatprep.subr.bf16.mxu0 %v1906_v46  ;;  %1785 = vmatprep.subr.bf16.mxu1 %v1906_v46 }
 0x14b   : > { %1678 = vmatpush3.bf16.msra.mxu0 %v1906_v46  ;;  %1793 = vmatpush3.bf16.msra.mxu1 %v1906_v46 }
 0x14c   : > { %1679 = vmatprep.subr.bf16.mxu0 %v1907_v47  ;;  %1786 = vmatprep.subr.bf16.mxu1 %v1907_v47 }
 0x14f   : > { %1680 = vmatpush3.bf16.msra.mxu0 %v1907_v47  ;;  %1794 = vmatpush3.bf16.msra.mxu1 %v1907_v47 }
 0x150   : > { %1681 = vmatprep.subr.bf16.mxu0 %v1908_v48  ;;  %1787 = vmatprep.subr.bf16.mxu1 %v1908_v48 }
 0x153   : > { %1682 = vmatpush3.bf16.msra.mxu0 %v1908_v48  ;;  %1795 = vmatpush3.bf16.msra.mxu1 %v1908_v48 }
 0x154   : > { %1683 = vmatprep.subr.bf16.mxu0 %v1909_v49  ;;  %1788 = vmatprep.subr.bf16.mxu1 %v1909_v49 }
 0x157   : > { %1684 = vmatpush3.bf16.msra.mxu0 %v1909_v49  ;;  %1796 = vmatpush3.bf16.msra.mxu1 %v1909_v49 }
 0x15a   : > { %1686 = vmatmul.mubr.bf16.vlgmr.msra.gmra.mrb[0].mxu0 %v522_v50  ;;  %1694 = vmatmul.mubr.bf16.vlgmr.msra.gmra.mrb[0].mxu1 %v526_v51 }
 0x15b   : > { %1689 = vmatprep.mubr.bf16.mxu0 %v523_v52  ;;  %1697 = vmatprep.mubr.bf16.mxu1 %v527_v53 }
 0x162   : > { %1690 = vmatmul.mubr.bf16.gmra.mrb[4].mxu0 %v524_v54  ;;  %1698 = vmatmul.mubr.bf16.gmra.mrb[4].mxu1 %v528_v55 }
 0x22d   : > { %v1687_v56 = vpop.f32.mrb[0].mxu0  ;;  %v1695_v57 = vpop.f32.mrb[0].mxu1 }
 0x22e   : > { %v627_v58 = vpop.f32.mrb[1].mxu0  ;;  %v659_v59 = vpop.f32.mrb[1].mxu1 }
 0x22f   : > { %v1688_v60 = vpop.f32.mrb[2].mxu0  ;;  %v1696_v61 = vpop.f32.mrb[2].mxu1 }
 0x230   : > { %v691_v62 = vpack.c.bf16 %v1688_v60, %v1687_v56  ;;  %v695_v63 = vpack.c.bf16 %v1696_v61, %v1695_v57  ;;  %v630_v0 = vpop.f32.mrb[3].mxu0  ;;  %v662_v1 = vpop.f32.mrb[3].mxu1 }
 0x231   : > { %v690_v2 = vpack.c.bf16 %v630_v0, %v627_v58  ;;  %v694_v3 = vpack.c.bf16 %v662_v1, %v659_v59 }
 0x232   : > { %699 = vst [vmem:[#allocation2 + $0x8] sm:$0xff] %v691_v62  ;;  %703 = vst [vmem:[#allocation2 + $0x28] sm:$0xff] %v695_v63 }
 0x233   : > { %698 = vst [vmem:[#allocation2] sm:$0xff] %v690_v2  ;;  %702 = vst [vmem:[#allocation2 + $0x20] sm:$0xff] %v694_v3 }
 0x235   : > { %v1691_v4 = vpop.f32.mrb[4].mxu0  ;;  %v1699_v5 = vpop.f32.mrb[4].mxu1 }
 0x236   : > { %v643_v6 = vpop.f32.mrb[5].mxu0  ;;  %v675_v7 = vpop.f32.mrb[5].mxu1 }
 0x237   : > { %v1692_v8 = vpop.f32.mrb[6].mxu0  ;;  %v1700_v9 = vpop.f32.mrb[6].mxu1 }
 0x238   : > { %v693_v10 = vpack.c.bf16 %v1692_v8, %v1691_v4  ;;  %v697_v11 = vpack.c.bf16 %v1700_v9, %v1699_v5  ;;  %v646_v12 = vpop.f32.mrb[7].mxu0  ;;  %v678_v13 = vpop.f32.mrb[7].mxu1 }
 0x239   : > { %v692_v14 = vpack.c.bf16 %v646_v12, %v643_v6  ;;  %v696_v15 = vpack.c.bf16 %v678_v13, %v675_v7 }
 0x23a   : > { %701 = vst [vmem:[#allocation2 + $0x18] sm:$0xff] %v693_v10  ;;  %705 = vst [vmem:[#allocation2 + $0x38] sm:$0xff] %v697_v11 }
 0x23b   : > { %700 = vst [vmem:[#allocation2 + $0x10] sm:$0xff] %v692_v14  ;;  %704 = vst [vmem:[#allocation2 + $0x30] sm:$0xff] %v696_v15 }
 0x23c PF: > { %p1468_p5 = scmp.ne.s32.totalorder %s2030_s18, 2 }
 0x23d   : > { %v1910_v16 = vld [vmem:[%s2165_s13] sm:$0xff] (!%p1468_p5)   ;;  %v1911_v17 = vld [vmem:[%s2165_s13 + $0x8] sm:$0xff] (!%p1468_p5)   ;;  %v1912_v18 = vld [vmem:[%s2165_s13 + $0x10] sm:$0xff] (!%p1468_p5)  }
 0x23e   : > { %709 = sbr.rel (%p1468_p5) target bundleno = 832 (0x340), region = 56  ;;  %1701 = vmatprep.subr.bf16.mxu0 (!%p1468_p5), %v1910_v16  ;;  %1797 = vmatprep.subr.bf16.mxu1 (!%p1468_p5), %v1910_v16  ;;  %v1913_v19 = vld [vmem:[%s2165_s13 + $0x18] sm:$0xff] (!%p1468_p5)   ;;  %v710_v20 = vld [vmem:[#allocation4] sm:$0xff] (!%p1468_p5)  ;;  %v1915_v23 = vld [vmem:[%s2165_s13 + $0x28] sm:$0xff] (!%p1468_p5)  }
 0x23f   : > { %1702 = vmatpush3.bf16.msra.mxu0 (!%p1468_p5), %v1910_v16  ;;  %1805 = vmatpush3.bf16.msra.mxu1 (!%p1468_p5), %v1910_v16  ;;  %v714_v21 = vld [vmem:[#allocation4 + $0x20] sm:$0xff] (!%p1468_p5)  ;;  %v1916_v24 = vld [vmem:[%s2165_s13 + $0x30] sm:$0xff] (!%p1468_p5)   ;;  %v1917_v25 = vld [vmem:[%s2165_s13 + $0x38] sm:$0xff] (!%p1468_p5)  }
 0x240   : > { %1703 = vmatprep.subr.bf16.mxu0 (!%p1468_p5), %v1911_v17  ;;  %1798 = vmatprep.subr.bf16.mxu1 (!%p1468_p5), %v1911_v17  ;;  %v1914_v22 = vld [vmem:[%s2165_s13 + $0x20] sm:$0xff] (!%p1468_p5)   ;;  %v711_v26 = vld [vmem:[#allocation4 + $0x8] sm:$0xff] (!%p1468_p5)  ;;  %v712_v28 = vld [vmem:[#allocation4 + $0x10] sm:$0xff] (!%p1468_p5) }
 0x241   : > { %1717 = vmatprep.mubr.bf16.mxu0 (!%p1468_p5), %v710_v20  ;;  %1725 = vmatprep.mubr.bf16.mxu1 (!%p1468_p5), %v714_v21  ;;  %v715_v27 = vld [vmem:[#allocation4 + $0x28] sm:$0xff] (!%p1468_p5)  ;;  %v716_v29 = vld [vmem:[#allocation4 + $0x30] sm:$0xff] (!%p1468_p5)  ;;  %v713_v30 = vld [vmem:[#allocation4 + $0x18] sm:$0xff] (!%p1468_p5) }
 0x242   : > { %v717_v31 = vld [vmem:[#allocation4 + $0x38] sm:$0xff] (!%p1468_p5) }
 0x243   : > { %1704 = vmatpush3.bf16.msra.mxu0 (!%p1468_p5), %v1911_v17  ;;  %1806 = vmatpush3.bf16.msra.mxu1 (!%p1468_p5), %v1911_v17 }
 0x244   : > { %1705 = vmatprep.subr.bf16.mxu0 (!%p1468_p5), %v1912_v18  ;;  %1799 = vmatprep.subr.bf16.mxu1 (!%p1468_p5), %v1912_v18 }
 0x247   : > { %1706 = vmatpush3.bf16.msra.mxu0 %v1912_v18  ;;  %1807 = vmatpush3.bf16.msra.mxu1 %v1912_v18 }
 0x248   : > { %1707 = vmatprep.subr.bf16.mxu0 %v1913_v19  ;;  %1800 = vmatprep.subr.bf16.mxu1 %v1913_v19 }
 0x24b   : > { %1708 = vmatpush3.bf16.msra.mxu0 %v1913_v19  ;;  %1808 = vmatpush3.bf16.msra.mxu1 %v1913_v19 }
 0x24c   : > { %1709 = vmatprep.subr.bf16.mxu0 %v1914_v22  ;;  %1801 = vmatprep.subr.bf16.mxu1 %v1914_v22 }
 0x24f   : > { %1710 = vmatpush3.bf16.msra.mxu0 %v1914_v22  ;;  %1809 = vmatpush3.bf16.msra.mxu1 %v1914_v22 }
 0x250   : > { %1711 = vmatprep.subr.bf16.mxu0 %v1915_v23  ;;  %1802 = vmatprep.subr.bf16.mxu1 %v1915_v23 }
 0x253   : > { %1712 = vmatpush3.bf16.msra.mxu0 %v1915_v23  ;;  %1810 = vmatpush3.bf16.msra.mxu1 %v1915_v23 }
 0x254   : > { %1713 = vmatprep.subr.bf16.mxu0 %v1916_v24  ;;  %1803 = vmatprep.subr.bf16.mxu1 %v1916_v24 }
 0x257   : > { %1714 = vmatpush3.bf16.msra.mxu0 %v1916_v24  ;;  %1811 = vmatpush3.bf16.msra.mxu1 %v1916_v24 }
 0x258   : > { %1715 = vmatprep.subr.bf16.mxu0 %v1917_v25  ;;  %1804 = vmatprep.subr.bf16.mxu1 %v1917_v25 }
 0x25b   : > { %1716 = vmatpush3.bf16.msra.mxu0 %v1917_v25  ;;  %1812 = vmatpush3.bf16.msra.mxu1 %v1917_v25 }
 0x25e   : > { %1718 = vmatmul.mubr.bf16.vlgmr.msra.gmra.mrb[0].mxu0 %v711_v26  ;;  %1726 = vmatmul.mubr.bf16.vlgmr.msra.gmra.mrb[0].mxu1 %v715_v27 }
 0x25f   : > { %1721 = vmatprep.mubr.bf16.mxu0 %v712_v28  ;;  %1729 = vmatprep.mubr.bf16.mxu1 %v716_v29 }
 0x266   : > { %1722 = vmatmul.mubr.bf16.gmra.mrb[4].mxu0 %v713_v30  ;;  %1730 = vmatmul.mubr.bf16.gmra.mrb[4].mxu1 %v717_v31 }
 0x331   : > { %v1719_v32 = vpop.f32.mrb[0].mxu0  ;;  %v1727_v33 = vpop.f32.mrb[0].mxu1 }
 0x332   : > { %v816_v34 = vpop.f32.mrb[1].mxu0  ;;  %v848_v35 = vpop.f32.mrb[1].mxu1 }
 0x333   : > { %v1720_v36 = vpop.f32.mrb[2].mxu0  ;;  %v1728_v37 = vpop.f32.mrb[2].mxu1 }
 0x334   : > { %v880_v38 = vpack.c.bf16 %v1720_v36, %v1719_v32  ;;  %v884_v39 = vpack.c.bf16 %v1728_v37, %v1727_v33  ;;  %v819_v40 = vpop.f32.mrb[3].mxu0  ;;  %v851_v41 = vpop.f32.mrb[3].mxu1 }
 0x335   : > { %v879_v42 = vpack.c.bf16 %v819_v40, %v816_v34  ;;  %v883_v43 = vpack.c.bf16 %v851_v41, %v848_v35 }
 0x336   : > { %888 = vst [vmem:[#allocation2 + $0x8] sm:$0xff] %v880_v38  ;;  %892 = vst [vmem:[#allocation2 + $0x28] sm:$0xff] %v884_v39 }
 0x337   : > { %887 = vst [vmem:[#allocation2] sm:$0xff] %v879_v42  ;;  %891 = vst [vmem:[#allocation2 + $0x20] sm:$0xff] %v883_v43 }
 0x339   : > { %v1723_v44 = vpop.f32.mrb[4].mxu0  ;;  %v1731_v45 = vpop.f32.mrb[4].mxu1 }
 0x33a   : > { %v832_v46 = vpop.f32.mrb[5].mxu0  ;;  %v864_v47 = vpop.f32.mrb[5].mxu1 }
 0x33b   : > { %v1724_v48 = vpop.f32.mrb[6].mxu0  ;;  %v1732_v49 = vpop.f32.mrb[6].mxu1 }
 0x33c   : > { %v882_v50 = vpack.c.bf16 %v1724_v48, %v1723_v44  ;;  %v886_v51 = vpack.c.bf16 %v1732_v49, %v1731_v45  ;;  %v835_v52 = vpop.f32.mrb[7].mxu0  ;;  %v867_v53 = vpop.f32.mrb[7].mxu1 }
 0x33d   : > { %v881_v54 = vpack.c.bf16 %v835_v52, %v832_v46  ;;  %v885_v55 = vpack.c.bf16 %v867_v53, %v864_v47 }
 0x33e   : > { %890 = vst [vmem:[#allocation2 + $0x18] sm:$0xff] %v882_v50  ;;  %894 = vst [vmem:[#allocation2 + $0x38] sm:$0xff] %v886_v51 }
 0x33f   : > { %889 = vst [vmem:[#allocation2 + $0x10] sm:$0xff] %v881_v54  ;;  %893 = vst [vmem:[#allocation2 + $0x30] sm:$0xff] %v885_v55 }
 0x340 PF: > { %v911_v56 = vld [vmem:[#allocation2] sm:$0xff]  ;;  %v912_v57 = vld [vmem:[#allocation2 + $0x8] sm:$0xff]  ;;  %v1922_v4 = vld [vmem:[%s2409_s0 + $0x10] sm:$0xff]  }
 0x341   : > { %1733 = vmatprep.subr.bf16.mxu0 %v911_v56  ;;  %1813 = vmatprep.subr.bf16.mxu1 %v911_v56  ;;  %v1918_v59 = vld [vmem:[%s2409_s0] sm:$0xff]   ;;  %v916_v63 = vld [vmem:[#allocation2 + $0x28] sm:$0xff]  ;;  %v1923_v5 = vld [vmem:[%s2409_s0 + $0x30] sm:$0xff]  }
 0x342   : > { %1734 = vmatpush3.bf16.msra.mxu0 %v911_v56  ;;  %1821 = vmatpush3.bf16.msra.mxu1 %v911_v56  ;;  %v1919_v60 = vld [vmem:[%s2409_s0 + $0x20] sm:$0xff]   ;;  %v1920_v2 = vld [vmem:[%s2409_s0 + $0x8] sm:$0xff]   ;;  %v1924_v6 = vld [vmem:[%s2409_s0 + $0x18] sm:$0xff]  }
 0x343   : > { %1735 = vmatprep.subr.bf16.mxu0 %v912_v57  ;;  %1814 = vmatprep.subr.bf16.mxu1 %v912_v57  ;;  %v915_v62 = vld [vmem:[#allocation2 + $0x20] sm:$0xff]  ;;  %v1921_v3 = vld [vmem:[%s2409_s0 + $0x28] sm:$0xff]   ;;  %v1925_v7 = vld [vmem:[%s2409_s0 + $0x38] sm:$0xff]  }
 0x344   : > { %1749 = vmatprep.mubr.bf16.mxu0 %v1918_v59  ;;  %1757 = vmatprep.mubr.bf16.mxu1 %v1919_v60  ;;  %v1477_v8 = vld [vmem:[%s260_s11] ss:$0 sm:$0xff] }
 0x345   : > { %v914_v61 = vld [vmem:[#allocation2 + $0x18] sm:$0xff] }
 0x346   : > { %v913_v58 = vld [vmem:[#allocation2 + $0x10] sm:$0xff]  ;;  %1736 = vmatpush3.bf16.msra.mxu0 %v912_v57  ;;  %1822 = vmatpush3.bf16.msra.mxu1 %v912_v57  ;;  %v918_v1 = vld [vmem:[#allocation2 + $0x38] sm:$0xff] }
 0x347   : > { %1737 = vmatprep.subr.bf16.mxu0 %v913_v58  ;;  %1815 = vmatprep.subr.bf16.mxu1 %v913_v58  ;;  %v917_v0 = vld [vmem:[#allocation2 + $0x30] sm:$0xff] }
 0x34a   : > { %1738 = vmatpush3.bf16.msra.mxu0 %v913_v58  ;;  %1823 = vmatpush3.bf16.msra.mxu1 %v913_v58 }
 0x34b   : > { %1739 = vmatprep.subr.bf16.mxu0 %v914_v61  ;;  %1816 = vmatprep.subr.bf16.mxu1 %v914_v61 }
 0x34e   : > { %1740 = vmatpush3.bf16.msra.mxu0 %v914_v61  ;;  %1824 = vmatpush3.bf16.msra.mxu1 %v914_v61 }
 0x34f   : > { %1741 = vmatprep.subr.bf16.mxu0 %v915_v62  ;;  %1817 = vmatprep.subr.bf16.mxu1 %v915_v62 }
 0x352   : > { %1742 = vmatpush3.bf16.msra.mxu0 %v915_v62  ;;  %1825 = vmatpush3.bf16.msra.mxu1 %v915_v62 }
 0x353   : > { %1743 = vmatprep.subr.bf16.mxu0 %v916_v63  ;;  %1818 = vmatprep.subr.bf16.mxu1 %v916_v63 }
 0x356   : > { %1744 = vmatpush3.bf16.msra.mxu0 %v916_v63  ;;  %1826 = vmatpush3.bf16.msra.mxu1 %v916_v63 }
 0x357   : > { %1745 = vmatprep.subr.bf16.mxu0 %v917_v0  ;;  %1819 = vmatprep.subr.bf16.mxu1 %v917_v0 }
 0x35a   : > { %1746 = vmatpush3.bf16.msra.mxu0 %v917_v0  ;;  %1827 = vmatpush3.bf16.msra.mxu1 %v917_v0 }
 0x35b   : > { %1747 = vmatprep.subr.bf16.mxu0 %v918_v1  ;;  %1820 = vmatprep.subr.bf16.mxu1 %v918_v1 }
 0x35e   : > { %1748 = vmatpush3.bf16.msra.mxu0 %v918_v1  ;;  %1828 = vmatpush3.bf16.msra.mxu1 %v918_v1 }
 0x361   : > { %1750 = vmatmul.mubr.bf16.vlgmr.msra.gmra.mrb[0].mxu0 %v1920_v2  ;;  %1758 = vmatmul.mubr.bf16.vlgmr.msra.gmra.mrb[0].mxu1 %v1921_v3 }
 0x362   : > { %1753 = vmatprep.mubr.bf16.mxu0 %v1922_v4  ;;  %1761 = vmatprep.mubr.bf16.mxu1 %v1923_v5 }
 0x369   : > { %1754 = vmatmul.mubr.bf16.gmra.mrb[4].mxu0 %v1924_v6  ;;  %1762 = vmatmul.mubr.bf16.gmra.mrb[4].mxu1 %v1925_v7 }
 0x434   : > { %v1751_v9 = vpop.f32.mrb[0].mxu0  ;;  %v1759_v10 = vpop.f32.mrb[0].mxu1 }
 0x435   : > { %v2265_v11 = vadd.f32 %v1751_v9, %v1477_v8  ;;  %v2267_v12 = vadd.f32 %v1759_v10, %v1477_v8  ;;  %v1008_v13 = vpop.f32.mrb[1].mxu0  ;;  %v1040_v14 = vpop.f32.mrb[1].mxu1 }
 0x436   : > { %v2269_v15 = vadd.f32 %v1477_v8, %v1008_v13  ;;  %v2271_v16 = vadd.f32 %v1477_v8, %v1040_v14  ;;  %v1752_v17 = vpop.f32.mrb[2].mxu0  ;;  %v1760_v18 = vpop.f32.mrb[2].mxu1 }
 0x437   : > { %v2273_v19 = vadd.f32 %v1752_v17, %v1477_v8  ;;  %v2275_v20 = vadd.f32 %v1760_v18, %v1477_v8  ;;  %v1011_v21 = vpop.f32.mrb[3].mxu0  ;;  %v1043_v22 = vpop.f32.mrb[3].mxu1  ;;  %v1078_v43 = vmax.f32 (!%p1442_p9), %v2265_v11, 0.0  ;;  %v1086_v55 = vmax.f32 (!%p1442_p9), %v2267_v12, 0.0 }
 0x438   : > { %v2277_v23 = vadd.f32 %v1477_v8, %v1011_v21  ;;  %v2279_v24 = vadd.f32 %v1477_v8, %v1043_v22  ;;  %v1076_v41 = vmax.f32 (!%p1442_p9), %v2269_v15, 0.0  ;;  %v1084_v51 = vmax.f32 (!%p1442_p9), %v2271_v16, 0.0 }
 0x439   : > { %v1079_v44 = vmax.f32 (!%p1442_p9), %v2273_v19, 0.0  ;;  %v1087_v56 = vmax.f32 (!%p1442_p9), %v2275_v20, 0.0 }
 0x43a   : > { %1075 = sbr.rel (%p1442_p9) target bundleno = 1095 (0x447), region = 60  ;;  %v1077_v42 = vmax.f32 (!%p1442_p9), %v2277_v23, 0.0  ;;  %v1085_v52 = vmax.f32 (!%p1442_p9), %v2279_v24, 0.0 }
 0x43b   : > { %v1093_v50 = vpack.c.bf16 (!%p1442_p9), %v1079_v44, %v1078_v43  ;;  %v1097_v61 = vpack.c.bf16 (!%p1442_p9), %v1087_v56, %v1086_v55 }
 0x43c   : > { %v1755_v25 = vpop.f32.mrb[4].mxu0  ;;  %v1763_v26 = vpop.f32.mrb[4].mxu1  ;;  %v1092_v49 = vpack.c.bf16 (!%p1442_p9), %v1077_v42, %v1076_v41  ;;  %v1096_v57 = vpack.c.bf16 (!%p1442_p9), %v1085_v52, %v1084_v51 }
 0x43d   : > { %v2281_v27 = vadd.f32 %v1755_v25, %v1477_v8  ;;  %v2283_v28 = vadd.f32 %v1763_v26, %v1477_v8  ;;  %v1024_v29 = vpop.f32.mrb[5].mxu0  ;;  %v1056_v30 = vpop.f32.mrb[5].mxu1  ;;  %1105 = vst [vmem:[#allocation3 + $0x8] sm:$0xff] (!%p1442_p9), %v1093_v50  ;;  %1109 = vst [vmem:[#allocation3 + $0x28] sm:$0xff] (!%p1442_p9), %v1097_v61 }
 0x43e   : > { %v2285_v31 = vadd.f32 %v1477_v8, %v1024_v29  ;;  %v2287_v32 = vadd.f32 %v1477_v8, %v1056_v30  ;;  %v1756_v33 = vpop.f32.mrb[6].mxu0  ;;  %v1764_v34 = vpop.f32.mrb[6].mxu1  ;;  %1104 = vst [vmem:[#allocation3] sm:$0xff] (!%p1442_p9), %v1092_v49  ;;  %1108 = vst [vmem:[#allocation3 + $0x20] sm:$0xff] (!%p1442_p9), %v1096_v57 }
 0x43f   : > { %v2289_v35 = vadd.f32 %v1756_v33, %v1477_v8  ;;  %v2291_v36 = vadd.f32 %v1764_v34, %v1477_v8  ;;  %v1027_v37 = vpop.f32.mrb[7].mxu0  ;;  %v1059_v38 = vpop.f32.mrb[7].mxu1  ;;  %v1082_v47 = vmax.f32 (!%p1442_p9), %v2281_v27, 0.0  ;;  %v1090_v60 = vmax.f32 (!%p1442_p9), %v2283_v28, 0.0 }
 0x440   : > { %v2293_v39 = vadd.f32 %v1477_v8, %v1027_v37  ;;  %v2295_v40 = vadd.f32 %v1477_v8, %v1059_v38  ;;  %v1080_v45 = vmax.f32 (!%p1442_p9), %v2285_v31, 0.0  ;;  %v1088_v58 = vmax.f32 (!%p1442_p9), %v2287_v32, 0.0 }
 0x441   : > { %v1083_v48 = vmax.f32 %v2289_v35, 0.0  ;;  %v1091_v62 = vmax.f32 %v2291_v36, 0.0 }
 0x442   : > { %v1081_v46 = vmax.f32 %v2293_v39, 0.0  ;;  %v1089_v59 = vmax.f32 %v2295_v40, 0.0 }
 0x443   : > { %v1095_v54 = vpack.c.bf16 %v1083_v48, %v1082_v47  ;;  %v1099_v0 = vpack.c.bf16 %v1091_v62, %v1090_v60 }
 0x444   : > { %v1094_v53 = vpack.c.bf16 %v1081_v46, %v1080_v45  ;;  %v1098_v63 = vpack.c.bf16 %v1089_v59, %v1088_v58 }
 0x445   : > { %1107 = vst [vmem:[#allocation3 + $0x18] sm:$0xff] %v1095_v54  ;;  %1111 = vst [vmem:[#allocation3 + $0x38] sm:$0xff] %v1099_v0 }
 0x446   : > { %1106 = vst [vmem:[#allocation3 + $0x10] sm:$0xff] %v1094_v53  ;;  %1110 = vst [vmem:[#allocation3 + $0x30] sm:$0xff] %v1098_v63 }
 0x447 PF: > { %1115 = sbr.rel (%p1459_p7) target bundleno = 1105 (0x451), region = 64  ;;  %v1116_v1 = vmax.f32 (!%p1459_p7), %v2269_v15, 0.0  ;;  %v1117_v2 = vmax.f32 (!%p1459_p7), %v2277_v23, 0.0  ;;  %v1118_v3 = vmax.f32 (!%p1459_p7), %v2265_v11, 0.0  ;;  %v1119_v4 = vmax.f32 (!%p1459_p7), %v2273_v19, 0.0 }
 0x448   : > { %v1120_v5 = vmax.f32 (!%p1459_p7), %v2285_v31, 0.0  ;;  %v1121_v6 = vmax.f32 (!%p1459_p7), %v2293_v39, 0.0  ;;  %v1122_v7 = vmax.f32 (!%p1459_p7), %v2281_v27, 0.0  ;;  %v1123_v8 = vmax.f32 (!%p1459_p7), %v2289_v35, 0.0 }
 0x449   : > { %v1132_v9 = vpack.c.bf16 (!%p1459_p7), %v1117_v2, %v1116_v1  ;;  %v1133_v10 = vpack.c.bf16 (!%p1459_p7), %v1119_v4, %v1118_v3  ;;  %v1124_v13 = vmax.f32 (!%p1459_p7), %v2271_v16, 0.0  ;;  %v1125_v14 = vmax.f32 (!%p1459_p7), %v2279_v24, 0.0 }
 0x44a   : > { %v1134_v17 = vpack.c.bf16 (!%p1459_p7), %v1121_v6, %v1120_v5  ;;  %v1135_v18 = vpack.c.bf16 (!%p1459_p7), %v1123_v8, %v1122_v7  ;;  %v1126_v21 = vmax.f32 (!%p1459_p7), %v2267_v12, 0.0  ;;  %v1127_v22 = vmax.f32 (!%p1459_p7), %v2275_v20, 0.0 }
 0x44b   : > { %1144 = vst [vmem:[#allocation4] sm:$0xff] (!%p1459_p7), %v1132_v9  ;;  %1145 = vst [vmem:[#allocation4 + $0x8] sm:$0xff] (!%p1459_p7), %v1133_v10  ;;  %v1136_v25 = vpack.c.bf16 (!%p1459_p7), %v1125_v14, %v1124_v13  ;;  %v1128_v26 = vmax.f32 (!%p1459_p7), %v2287_v32, 0.0  ;;  %v1129_v29 = vmax.f32 (!%p1459_p7), %v2295_v40, 0.0  ;;  %v1130_v30 = vmax.f32 (!%p1459_p7), %v2283_v28, 0.0 }
 0x44c   : > { %1146 = vst [vmem:[#allocation4 + $0x10] sm:$0xff] (!%p1459_p7), %v1134_v17  ;;  %1147 = vst [vmem:[#allocation4 + $0x18] sm:$0xff] (!%p1459_p7), %v1135_v18  ;;  %v1137_v33 = vpack.c.bf16 (!%p1459_p7), %v1127_v22, %v1126_v21  ;;  %v1131_v34 = vmax.f32 (!%p1459_p7), %v2291_v36, 0.0 }
 0x44d   : > { %1148 = vst [vmem:[#allocation4 + $0x20] sm:$0xff] (!%p1459_p7), %v1136_v25  ;;  %v1138_v37 = vpack.c.bf16 (!%p1459_p7), %v1129_v29, %v1128_v26 }
 0x44e   : > { %1149 = vst [vmem:[#allocation4 + $0x28] sm:$0xff] %v1137_v33  ;;  %v1139_v38 = vpack.c.bf16 %v1131_v34, %v1130_v30 }
 0x44f   : > { %1150 = vst [vmem:[#allocation4 + $0x30] sm:$0xff] %v1138_v37 }
 0x450   : > { %1151 = vst [vmem:[#allocation4 + $0x38] sm:$0xff] %v1139_v38 }
 0x451 PF: > { %1155 = sbr.rel (%p1468_p5) target bundleno = 1296 (0x510), region = 68  ;;  %v1158_v41 = vand.u32 (!%p1468_p5), 2147483647, %v2265_v11  ;;  %v1156_v42 = vand.u32 (!%p1468_p5), 2147483647, %v2269_v15 }
 0x452   : > { %v1159_v43 = vand.u32 (!%p1468_p5), 2147483647, %v2273_v19  ;;  %v1157_v44 = vand.u32 (!%p1468_p5), 2147483647, %v2277_v23  ;;  %v1161_v45 = vand.u32 (!%p1468_p5), 2147483647, %v2293_v39 }
 0x453   : > { %1176 = vadd.xlane.f32.xlu1 (!%p1468_p5), %v1158_v41  ;;  %1172 = vadd.xlane.f32.xlu0 (!%p1468_p5), %v1156_v42  ;;  %v1160_v46 = vand.u32 (!%p1468_p5), 2147483647, %v2285_v31  ;;  %v1163_v47 = vand.u32 (!%p1468_p5), 2147483647, %v2289_v35  ;;  %v1162_v48 = vand.u32 (!%p1468_p5), 2147483647, %v2281_v27 }
 0x454   : > { %v1165_v49 = vand.u32 (!%p1468_p5), 2147483647, %v2279_v24  ;;  %v1164_v50 = vand.u32 (!%p1468_p5), 2147483647, %v2271_v16  ;;  %v1167_v51 = vand.u32 (!%p1468_p5), 2147483647, %v2275_v20 }
 0x455   : > { %v1166_v52 = vand.u32 (!%p1468_p5), 2147483647, %v2267_v12  ;;  %v1169_v53 = vand.u32 (!%p1468_p5), 2147483647, %v2295_v40  ;;  %v1168_v54 = vand.u32 (!%p1468_p5), 2147483647, %v2287_v32 }
 0x456   : > { %v1171_v55 = vand.u32 (!%p1468_p5), 2147483647, %v2291_v36  ;;  %v1170_v56 = vand.u32 (!%p1468_p5), 2147483647, %v2283_v28 }
 0x457   : > { %1178 = vadd.xlane.f32.xlu1 (!%p1468_p5), %v1159_v43  ;;  %1174 = vadd.xlane.f32.xlu0 (!%p1468_p5), %v1157_v44 }
 0x45b   : > { %1182 = vadd.xlane.f32.xlu1 %v1161_v45  ;;  %1180 = vadd.xlane.f32.xlu0 %v1160_v46 }
 0x45f   : > { %1186 = vadd.xlane.f32.xlu1 %v1163_v47  ;;  %1184 = vadd.xlane.f32.xlu0 %v1162_v48 }
 0x463   : > { %1190 = vadd.xlane.f32.xlu1 %v1165_v49  ;;  %1188 = vadd.xlane.f32.xlu0 %v1164_v50 }
 0x467   : > { %1194 = vadd.xlane.f32.xlu1 %v1167_v51  ;;  %1192 = vadd.xlane.f32.xlu0 %v1166_v52 }
 0x46b   : > { %1198 = vadd.xlane.f32.xlu1 %v1169_v53  ;;  %1196 = vadd.xlane.f32.xlu0 %v1168_v54 }
 0x46f   : > { %1202 = vadd.xlane.f32.xlu1 %v1171_v55  ;;  %1200 = vadd.xlane.f32.xlu0 %v1170_v56 }
 0x4e0   : > { %v1177_v57 = vpop.xlane.xlu1 %1176  ;;  %v1173_v58 = vpop.xlane.xlu0 %1172 }
 0x4e1   : > { %v1206_v59 = vmax.f32 %v1177_v57, 1e-12  ;;  %v1204_v60 = vmax.f32 %v1173_v58, 1e-12 }
 0x4e3   : > { %1926 = vrcp.f32 %v1206_v59 }
 0x4e4   : > { %v1179_v61 = vpop.xlane.xlu1 %1178  ;;  %v1175_v62 = vpop.xlane.xlu0 %1174  ;;  %1928 = vrcp.f32 %v1204_v60 }
 0x4e5   : > { %v1207_v63 = vmax.f32 %v1179_v61, 1e-12  ;;  %v1205_v0 = vmax.f32 %v1175_v62, 1e-12 }
 0x4e7   : > { %1930 = vrcp.f32 %v1207_v63 }
 0x4e8   : > { %1932 = vrcp.f32 %v1205_v0  ;;  %v1183_v1 = vpop.xlane.xlu1 %1182  ;;  %v1181_v2 = vpop.xlane.xlu0 %1180 }
 0x4e9   : > { %v1209_v3 = vmax.f32 %v1183_v1, 1e-12  ;;  %v1208_v4 = vmax.f32 %v1181_v2, 1e-12 }
 0x4eb   : > { %1934 = vrcp.f32 %v1209_v3 }
 0x4ec   : > { %1936 = vrcp.f32 %v1208_v4  ;;  %v1187_v5 = vpop.xlane.xlu1 %1186  ;;  %v1185_v6 = vpop.xlane.xlu0 %1184 }
 0x4ed   : > { %v1211_v7 = vmax.f32 %v1187_v5, 1e-12  ;;  %v1210_v8 = vmax.f32 %v1185_v6, 1e-12  ;;  %v1927_v9 = vpop.eup %1926 }
 0x4ee   : > { %v1929_v10 = vpop.eup %1928  ;;  %v1225_v25 = vmul.f32 %v1927_v9, %v2265_v11 }
 0x4ef   : > { %1938 = vrcp.f32 %v1211_v7  ;;  %v1221_v29 = vmul.f32 %v1929_v10, %v2269_v15 }
 0x4f0   : > { %1940 = vrcp.f32 %v1210_v8  ;;  %v1191_v13 = vpop.xlane.xlu1 %1190  ;;  %v1189_v14 = vpop.xlane.xlu0 %1188 }
 0x4f1   : > { %v1931_v17 = vpop.eup %1930  ;;  %v1213_v18 = vmax.f32 %v1191_v13, 1e-12  ;;  %v1212_v21 = vmax.f32 %v1189_v14, 1e-12 }
 0x4f2   : > { %v1933_v22 = vpop.eup %1932  ;;  %v1227_v26 = vmul.f32 %v1931_v17, %v2273_v19 }
 0x4f3   : > { %v1223_v30 = vmul.f32 %v1933_v22, %v2277_v23  ;;  %1942 = vrcp.f32 %v1213_v18 }
 0x4f4   : > { %v1534_v33 = vpack.c.bf16 %v1227_v26, %v1225_v25  ;;  %1944 = vrcp.f32 %v1212_v21  ;;  %v1195_v34 = vpop.xlane.xlu1 %1194  ;;  %v1193_v37 = vpop.xlane.xlu0 %1192 }
 0x4f5   : > { %v1935_v38 = vpop.eup %1934  ;;  %v1529_v41 = vpack.c.bf16 %v1223_v30, %v1221_v29  ;;  %v1215_v42 = vmax.f32 %v1195_v34, 1e-12  ;;  %v1214_v43 = vmax.f32 %v1193_v37, 1e-12 }
 0x4f6   : > { %v1937_v44 = vpop.eup %1936  ;;  %1566 = vst [vmem:[%s2413_s4 + $0x8] sm:$0xff] %v1534_v33   ;;  %v1231_v11 = vmul.f32 %v1935_v38, %v2293_v39 }
 0x4f7   : > { %1530 = vst [vmem:[%s2413_s4] sm:$0xff] %v1529_v41   ;;  %v1229_v15 = vmul.f32 %v1937_v44, %v2285_v31  ;;  %1946 = vrcp.f32 %v1215_v42 }
 0x4f8   : > { %1948 = vrcp.f32 %v1214_v43  ;;  %v1199_v19 = vpop.xlane.xlu1 %1198  ;;  %v1197_v23 = vpop.xlane.xlu0 %1196 }
 0x4f9   : > { %v1939_v45 = vpop.eup %1938  ;;  %v1539_v46 = vpack.c.bf16 %v1231_v11, %v1229_v15  ;;  %v1217_v47 = vmax.f32 %v1199_v19, 1e-12  ;;  %v1216_v48 = vmax.f32 %v1197_v23, 1e-12 }
 0x4fa   : > { %v1941_v49 = vpop.eup %1940  ;;  %v1235_v50 = vmul.f32 %v1939_v45, %v2289_v35 }
 0x4fb   : > { %1567 = vst [vmem:[%s2413_s4 + $0x10] sm:$0xff] %v1539_v46   ;;  %v1233_v39 = vmul.f32 %v1941_v49, %v2281_v27  ;;  %1950 = vrcp.f32 %v1217_v47 }
 0x4fc   : > { %1952 = vrcp.f32 %v1216_v48  ;;  %v1203_v31 = vpop.xlane.xlu1 %1202  ;;  %v1201_v51 = vpop.xlane.xlu0 %1200 }
 0x4fd   : > { %v1943_v52 = vpop.eup %1942  ;;  %v1544_v53 = vpack.c.bf16 %v1235_v50, %v1233_v39  ;;  %v1219_v54 = vmax.f32 %v1203_v31, 1e-12  ;;  %v1218_v55 = vmax.f32 %v1201_v51, 1e-12 }
 0x4fe   : > { %v1945_v56 = vpop.eup %1944  ;;  %v1239_v57 = vmul.f32 %v1943_v52, %v2279_v24 }
 0x4ff   : > { %1568 = vst [vmem:[%s2413_s4 + $0x18] sm:$0xff] %v1544_v53   ;;  %v1237_v35 = vmul.f32 %v1945_v56, %v2271_v16  ;;  %1954 = vrcp.f32 %v1219_v54 }
 0x500   : > { %1956 = vrcp.f32 %v1218_v55 }
 0x501   : > { %v1947_v27 = vpop.eup %1946  ;;  %v1549_v58 = vpack.c.bf16 %v1239_v57, %v1237_v35 }
 0x502   : > { %v1949_v59 = vpop.eup %1948  ;;  %v1243_v60 = vmul.f32 %v1947_v27, %v2275_v20 }
 0x503   : > { %1569 = vst [vmem:[%s2413_s4 + $0x20] sm:$0xff] %v1549_v58   ;;  %v1241_v61 = vmul.f32 %v1949_v59, %v2267_v12 }
 0x505   : > { %v1951_v24 = vpop.eup %1950  ;;  %v1554_v62 = vpack.c.bf16 %v1243_v60, %v1241_v61 }
 0x506   : > { %v1953_v63 = vpop.eup %1952  ;;  %v1247_v0 = vmul.f32 %v1951_v24, %v2295_v40 }
 0x507   : > { %1570 = vst [vmem:[%s2413_s4 + $0x28] sm:$0xff] %v1554_v62   ;;  %v1245_v16 = vmul.f32 %v1953_v63, %v2287_v32 }
 0x509   : > { %v1955_v1 = vpop.eup %1954  ;;  %v1559_v2 = vpack.c.bf16 %v1247_v0, %v1245_v16 }
 0x50a   : > { %v1957_v20 = vpop.eup %1956  ;;  %v1251_v3 = vmul.f32 %v1955_v1, %v2291_v36 }
 0x50b   : > { %1571 = vst [vmem:[%s2413_s4 + $0x30] sm:$0xff] %v1559_v2   ;;  %v1249_v12 = vmul.f32 %v1957_v20, %v2283_v28 }
 0x50d   : > { %v1564_v4 = vpack.c.bf16 %v1251_v3, %v1249_v12 }
 0x50f   : > { %1572 = vst [vmem:[%s2413_s4 + $0x38] sm:$0xff] %v1564_v4  }
 0x510 PF: > { %s17_s20 = sadd.s32 1, %s2038_s20   ;;  %s2417_s15 = smov %s2022_s16 }
 0x511   : > { %p14_p6 = scmp.ge.s32.totalorder %s17_s20, 5   ;;  %s2418_s16 = smov %s2026_s17 }
 0x512   : > { %s2419_s17 = smov %s2117_s27  ;;  %s2420_s18 = smov %s2034_s19 }
 0x513   : > { %s2421_s19 = smov %s2423_s22  ;;  %16 = sbr.rel (!%p14_p6) target bundleno = 4 (0x4), region = 112 }
 0x51a   :  { %1354 = vsyncpa [#allocation6], 1 }
 0x51b   :  { %1356 = vsyncpa [#allocation6 + $0x1], 1 }

</bundles_post_ra>
